<compile_context>
chip_gen: v6e
topology: v6e:2x2x1
jax: 0.10.0
libtpu: 0.0.40
codegen_flags: <defaults>
</compile_context>

<pallas_src>
import functools

import numpy as np
import jax
import jax.numpy as jnp
from jax.experimental import pallas as pl
from jax.experimental.pallas import tpu as pltpu


# ----------------------------------------------------------------------------
# Host-side helpers (deterministic "parameters" of the fixed MultiScaleSTFT)
# ----------------------------------------------------------------------------
def _build_windowed_basis(n_fft):
    """Hann-windowed real-DFT basis as one fused (n_fft, 2*nb_pad) matrix.

    Columns [0, nb) hold the cos (real) basis, columns [nb_pad, nb_pad+nb)
    hold the -sin (imag) basis; both zero-padded to a lane-dense multiple of
    128 on the frequency axis (padded columns contribute exactly 0 everywhere).
    """
    nb = n_fft // 2 + 1
    nb_pad = max(128, -(-nb // 128) * 128)
    n = np.arange(n_fft)
    k = np.arange(nb)
    ang = 2.0 * np.pi * np.outer(n, k) / n_fft
    win = 0.5 * (1.0 - np.cos(2.0 * np.pi * n / n_fft))      # periodic hann
    basis = np.zeros((n_fft, 2 * nb_pad), np.float32)
    basis[:, :nb] = win[:, None] * np.cos(ang)
    basis[:, nb_pad:nb_pad + nb] = -win[:, None] * np.sin(ang)
    return basis, nb, nb_pad


def _frame_signal(sig_bct, n_fft, hop):
    """(B, C, T) -> (B*C*n_frames, n_fft) centered frames (reflect padding)."""
    B, C, T = sig_bct.shape
    pad = n_fft // 2
    s = sig_bct.reshape(B * C, T).astype(jnp.float32)
    mode = "reflect" if T > pad else "constant"   # jnp reflect needs pad < T
    sp = jnp.pad(s, ((0, 0), (pad, pad)), mode=mode)
    n_frames = 1 + (T + 2 * pad - n_fft) // hop
    idx = np.arange(n_frames)[:, None] * hop + np.arange(n_fft)[None, :]
    frames = sp[:, idx]                            # (B*C, n_frames, n_fft)
    return frames.reshape(-1, n_fft)


# ----------------------------------------------------------------------------
# Pallas kernel: per row tile -> one fused bf16 matmul + chunked tail, vector
# accumulation into the resident output block.
# ----------------------------------------------------------------------------
def _spec_dist_kernel(f_ref, basis_ref, o_ref, *, log_epsilon, tile_rows, nb_pad):
    """Accumulates into o_ref[0] (shape (3, T, 128)):
         [0] sum (mx - my)^2   [1] sum mx^2   [2] sum |log(mx+e) - log(my+e)|
       Zero-padded rows / frequency columns contribute exactly 0 to all three.
    """
    @pl.when(pl.program_id(1) == 0)
    def _init():
        o_ref[...] = jnp.zeros_like(o_ref)

    fxy = f_ref[0, :, :]                     # (2T, n_fft) bf16; [0,T)=x, [T,2T)=y
    # Single MXU pass: weight-stationary RHS reused for x & y, cos & sin.
    res = jnp.dot(fxy, basis_ref[...], preferred_element_type=jnp.float32)

    T = tile_rows
    acc_dd = o_ref[0, 0, :, :]
    acc_px = o_ref[0, 1, :, :]
    acc_ld = o_ref[0, 2, :, :]

    # Elementwise tail in 128-lane frequency chunks: keeps the working set
    # near vreg-sized for large n_fft; px is reused for both the magnitude
    # and the relative-L2 denominator (no mx*mx recompute).
    for j in range(nb_pad // 128):
        lo, hi = j * 128, (j + 1) * 128
        xr = res[:T, lo:hi]
        xi = res[:T, nb_pad + lo:nb_pad + hi]
        yr = res[T:, lo:hi]
        yi = res[T:, nb_pad + lo:nb_pad + hi]
        px = xr * xr + xi * xi
        py = yr * yr + yi * yi
        mx = jnp.sqrt(px)
        my = jnp.sqrt(py)
        d = mx - my
        acc_dd = acc_dd + d * d
        acc_px = acc_px + px
        acc_ld = acc_ld + jnp.abs(jnp.log(mx + log_epsilon)
                                  - jnp.log(my + log_epsilon))

    o_ref[0, 0, :, :] = acc_dd
    o_ref[0, 1, :, :] = acc_px
    o_ref[0, 2, :, :] = acc_ld


def spectral_distance_pallas(x, y, n_fft, log_epsilon, num_cores=2):
    """Single-scale spectral distance (relative-L2 + log-L1), Pallas backed."""
    hop = n_fft // 4
    fx = _frame_signal(x, n_fft, hop)              # (rows, n_fft) f32
    fy = _frame_signal(y, n_fft, hop)
    rows = fx.shape[0]

    # Row-tile size: big M tiles for small n_fft (amortize per-step overhead,
    # fill the MXU -- most valuable on v5e), clamped so tiny inputs don't
    # over-pad.  Must stay a multiple of 8.
    tile_rows = 256 if n_fft <= 256 else 128
    per_core = -(-rows // num_cores)
    tile_rows = min(tile_rows, -(-per_core // 8) * 8)

    nt = -(-rows // tile_rows)
    nt = -(-nt // num_cores) * num_cores           # shardable across 2 TCs (v7x)
    rows_p = nt * tile_rows
    fx = jnp.pad(fx, ((0, rows_p - rows), (0, 0)))
    fy = jnp.pad(fy, ((0, rows_p - rows), (0, 0)))

    # Stack per tile: grid block b = [fx tile b ; fy tile b] -> one fused matmul.
    f = jnp.concatenate(
        [fx.reshape(nt, tile_rows, n_fft), fy.reshape(nt, tile_rows, n_fft)],
        axis=1).astype(jnp.bfloat16)               # (nt, 2*tile_rows, n_fft)

    basis_np, nb, nb_pad = _build_windowed_basis(n_fft)
    basis = jnp.asarray(basis_np, dtype=jnp.bfloat16)   # (n_fft, 2*nb_pad)

    nt_per_core = nt // num_cores
    kernel = functools.partial(_spec_dist_kernel,
                               log_epsilon=float(log_epsilon),
                               tile_rows=tile_rows, nb_pad=nb_pad)

    partials = pl.pallas_call(
        kernel,
        out_shape=jax.ShapeDtypeStruct((num_cores, 3, tile_rows, 128),
                                       jnp.float32),
        grid=(num_cores, nt_per_core),
        in_specs=[
            pl.BlockSpec((1, 2 * tile_rows, n_fft),
                         lambda c, i: (c * nt_per_core + i, 0, 0)),
            # Basis: constant block index -> stays resident, no re-DMA per step.
            pl.BlockSpec((n_fft, 2 * nb_pad), lambda c, i: (0, 0)),
        ],
        out_specs=pl.BlockSpec((1, 3, tile_rows, 128),
                               lambda c, i: (c, 0, 0, 0)),
        compiler_params=pltpu.CompilerParams(
            dimension_semantics=("parallel", "arbitrary"),
            vmem_limit_bytes=48 * 1024 * 1024),
    )(f, basis)

    sums = jnp.sum(partials, axis=(0, 2, 3))       # -> (3,) in f32
    count = rows * nb                              # real spectrogram elements
    lin_distance = sums[0] / sums[1]               # mean(d^2) / mean(mx^2)
    log_distance = sums[2] / jnp.float32(count)
    return lin_distance + log_distance


# ----------------------------------------------------------------------------
# AudioDistanceV1 forward (Pallas-backed)
# ----------------------------------------------------------------------------
class AudioDistanceV1Pallas:
    """Pallas-TPU port of AudioDistanceV1 with a RAVE-style MultiScaleSTFT."""

    def __init__(self, scales, log_epsilon):
        self.scales = tuple(int(s) for s in scales)
        self.log_epsilon = float(log_epsilon)

    def __call__(self, x, y):
        distance = jnp.float32(0.0)
        for s in self.scales:
            distance = distance + spectral_distance_pallas(
                x, y, s, self.log_epsilon)
        return {"spectral_distance": distance}


# ----------------------------------------------------------------------------
# Pure-JAX f32 reference (same framing / basis) for the sanity check
# ----------------------------------------------------------------------------
def _spectral_distance_ref(x, y, n_fft, log_epsilon):
    hop = n_fft // 4
    fx = _frame_signal(x, n_fft, hop)
    fy = _frame_signal(y, n_fft, hop)
    basis_np, nb, nb_pad = _build_windowed_basis(n_fft)
    cos_m = jnp.asarray(basis_np[:, :nb])
    sin_m = jnp.asarray(basis_np[:, nb_pad:nb_pad + nb])
    mx = jnp.sqrt((fx @ cos_m) ** 2 + (fx @ sin_m) ** 2)
    my = jnp.sqrt((fy @ cos_m) ** 2 + (fy @ sin_m) ** 2)
    lin = jnp.mean((mx - my) ** 2) / jnp.mean(mx * mx)
    log = jnp.mean(jnp.abs(jnp.log(mx + log_epsilon) - jnp.log(my + log_epsilon)))
    return lin + log


def _ref_forward(x, y, scales, log_epsilon):
    d = jnp.float32(0.0)
    for s in scales:
        d = d + _spectral_distance_ref(x, y, s, log_epsilon)
    return {"spectral_distance": d}


if __name__ == "__main__":
    key = jax.random.PRNGKey(0)
    k1, k2 = jax.random.split(key)
    B, C, T = 2, 1, 512                      # (batch, channels, time) -- NCT
    scales = (32, 64)
    log_epsilon = 1e-7

    x = jax.random.normal(k1, (B, C, T), dtype=jnp.float32)
    y = x + 0.1 * jax.random.normal(k2, (B, C, T), dtype=jnp.float32)

    model = AudioDistanceV1Pallas(scales, log_epsilon)
    fwd = jax.jit(lambda a, b: model(a, b))
    out = fwd(x, y)
    out = jax.tree_util.tree_map(jax.block_until_ready, out)

    ref = _ref_forward(x, y, scales, log_epsilon)
    np.testing.assert_allclose(
        np.asarray(out["spectral_distance"]),
        np.asarray(ref["spectral_distance"]),
        rtol=5e-2, atol=5e-3,
    )

    print("KERNEL_OK")
</pallas_src>

<mosaic_0001>
module attributes {stable_mosaic.version = 11 : i64} {
  func.func @_spec_dist_kernel(%arg0: i32, %arg1: i32, %arg2: memref<1x80x64xbf16, #tpu.memory_space<vmem>>, %arg3: memref<64x256xbf16, #tpu.memory_space<vmem>>, %arg4: memref<1x3x40x128xf32, #tpu.memory_space<vmem>>) attributes {dimension_semantics = [#tpu.dimension_semantics<parallel>, #tpu.dimension_semantics<arbitrary>], iteration_bounds = array<i64: 2, 1>, scalar_prefetch = 0 : i64, scratch_operands = 0 : i64, tpu.core_type = #tpu.core_type<tc>, window_params = [{transform_indices = @transform_0, window_bounds = array<i64: 1, 80, 64>}, {pipeline_mode = #tpu.pipeline_mode<synchronous>, transform_indices = @transform_1, window_bounds = array<i64: 64, 256>}, {transform_indices = @transform_2, window_bounds = array<i64: 1, 3, 40, 128>}]} {
    %c0_i32 = arith.constant 0 : i32
    %0 = arith.cmpi eq, %arg1, %c0_i32 : i32
    %1 = arith.extui %0 : i1 to i32
    %c0_i32_0 = arith.constant 0 : i32
    %2 = arith.cmpi ne, %1, %c0_i32_0 : i32
    scf.if %2 {
      %cst_29 = arith.constant 0.000000e+00 : f32
      %47 = vector.broadcast %cst_29 : f32 to vector<1x3x40x128xf32>
      %c0_30 = arith.constant 0 : index
      %c0_31 = arith.constant 0 : index
      %c0_32 = arith.constant 0 : index
      %c0_33 = arith.constant 0 : index
      %48 = vector.load %arg4[%c0_30, %c0_31, %c0_32, %c0_33] : memref<1x3x40x128xf32, #tpu.memory_space<vmem>>, vector<1x3x40x128xf32>
      tpu.vector_store %arg4[%c0_30, %c0_31, %c0_32, %c0_33], %47 {strides = array<i32>} : memref<1x3x40x128xf32, #tpu.memory_space<vmem>>, vector<1x3x40x128xf32>,
    } else {
    }
    %c0 = arith.constant 0 : index
    %c0_1 = arith.constant 0 : index
    %c0_2 = arith.constant 0 : index
    %3 = vector.load %arg2[%c0, %c0_1, %c0_2] : memref<1x80x64xbf16, #tpu.memory_space<vmem>>, vector<1x80x64xbf16>
    %4 = vector.shape_cast %3 : vector<1x80x64xbf16> to vector<80x64xbf16>
    %c0_3 = arith.constant 0 : index
    %c0_4 = arith.constant 0 : index
    %5 = vector.load %arg3[%c0_3, %c0_4] : memref<64x256xbf16, #tpu.memory_space<vmem>>, vector<64x256xbf16>
    %cst = arith.constant dense<0.000000e+00> : vector<80x256xf32>
    %6 = tpu.matmul %4, %5, %cst {dimension_numbers = #tpu.dot_dimension_numbers<[1], [0], [0], [1], [0, 0, 1, 1], [], []>} : vector<80x64xbf16>, vector<64x256xbf16>, vector<80x256xf32> -> vector<80x256xf32>
    %c0_5 = arith.constant 0 : index
    %c0_6 = arith.constant 0 : index
    %c0_7 = arith.constant 0 : index
    %c0_8 = arith.constant 0 : index
    %7 = vector.load %arg4[%c0_5, %c0_6, %c0_7, %c0_8] : memref<1x3x40x128xf32, #tpu.memory_space<vmem>>, vector<1x1x40x128xf32>
    %8 = vector.shape_cast %7 : vector<1x1x40x128xf32> to vector<40x128xf32>
    %c0_9 = arith.constant 0 : index
    %c1 = arith.constant 1 : index
    %c0_10 = arith.constant 0 : index
    %c0_11 = arith.constant 0 : index
    %9 = vector.load %arg4[%c0_9, %c1, %c0_10, %c0_11] : memref<1x3x40x128xf32, #tpu.memory_space<vmem>>, vector<1x1x40x128xf32>
    %10 = vector.shape_cast %9 : vector<1x1x40x128xf32> to vector<40x128xf32>
    %c0_12 = arith.constant 0 : index
    %c2 = arith.constant 2 : index
    %c0_13 = arith.constant 0 : index
    %c0_14 = arith.constant 0 : index
    %11 = vector.load %arg4[%c0_12, %c2, %c0_13, %c0_14] : memref<1x3x40x128xf32, #tpu.memory_space<vmem>>, vector<1x1x40x128xf32>
    %12 = vector.shape_cast %11 : vector<1x1x40x128xf32> to vector<40x128xf32>
    %13 = vector.extract_strided_slice %6 {offsets = [0, 0], sizes = [40, 128], strides = [1, 1]} : vector<80x256xf32> to vector<40x128xf32>
    %14 = vector.extract_strided_slice %6 {offsets = [0, 128], sizes = [40, 128], strides = [1, 1]} : vector<80x256xf32> to vector<40x128xf32>
    %15 = vector.extract_strided_slice %6 {offsets = [40, 0], sizes = [40, 128], strides = [1, 1]} : vector<80x256xf32> to vector<40x128xf32>
    %16 = vector.extract_strided_slice %6 {offsets = [40, 128], sizes = [40, 128], strides = [1, 1]} : vector<80x256xf32> to vector<40x128xf32>
    %17 = arith.mulf %13, %13 : vector<40x128xf32>
    %18 = arith.mulf %14, %14 : vector<40x128xf32>
    %19 = arith.addf %17, %18 : vector<40x128xf32>
    %20 = arith.mulf %15, %15 : vector<40x128xf32>
    %21 = arith.mulf %16, %16 : vector<40x128xf32>
    %22 = arith.addf %20, %21 : vector<40x128xf32>
    %23 = math.sqrt %19 : vector<40x128xf32>
    %24 = math.sqrt %22 : vector<40x128xf32>
    %25 = arith.subf %23, %24 : vector<40x128xf32>
    %26 = arith.mulf %25, %25 : vector<40x128xf32>
    %27 = arith.addf %8, %26 : vector<40x128xf32>
    %28 = arith.addf %10, %19 : vector<40x128xf32>
    %cst_15 = arith.constant 1.000000e-07 : f32
    %29 = vector.broadcast %cst_15 : f32 to vector<40x128xf32>
    %30 = arith.addf %23, %29 : vector<40x128xf32>
    %31 = math.log %30 : vector<40x128xf32>
    %cst_16 = arith.constant 1.000000e-07 : f32
    %32 = vector.broadcast %cst_16 : f32 to vector<40x128xf32>
    %33 = arith.addf %24, %32 : vector<40x128xf32>
    %34 = math.log %33 : vector<40x128xf32>
    %35 = arith.subf %31, %34 : vector<40x128xf32>
    %36 = math.absf %35 : vector<40x128xf32>
    %37 = arith.addf %12, %36 : vector<40x128xf32>
    %c0_17 = arith.constant 0 : index
    %c0_18 = arith.constant 0 : index
    %c0_19 = arith.constant 0 : index
    %c0_20 = arith.constant 0 : index
    %38 = vector.load %arg4[%c0_17, %c0_18, %c0_19, %c0_20] : memref<1x3x40x128xf32, #tpu.memory_space<vmem>>, vector<1x1x40x128xf32>
    %39 = vector.shape_cast %38 : vector<1x1x40x128xf32> to vector<40x128xf32>
    %40 = vector.shape_cast %27 : vector<40x128xf32> to vector<1x1x40x128xf32>
    tpu.vector_store %arg4[%c0_17, %c0_18, %c0_19, %c0_20], %40 {strides = array<i32>} : memref<1x3x40x128xf32, #tpu.memory_space<vmem>>, vector<1x1x40x128xf32>,
    %c0_21 = arith.constant 0 : index
    %c1_22 = arith.constant 1 : index
    %c0_23 = arith.constant 0 : index
    %c0_24 = arith.constant 0 : index
    %41 = vector.load %arg4[%c0_21, %c1_22, %c0_23, %c0_24] : memref<1x3x40x128xf32, #tpu.memory_space<vmem>>, vector<1x1x40x128xf32>
    %42 = vector.shape_cast %41 : vector<1x1x40x128xf32> to vector<40x128xf32>
    %43 = vector.shape_cast %28 : vector<40x128xf32> to vector<1x1x40x128xf32>
    tpu.vector_store %arg4[%c0_21, %c1_22, %c0_23, %c0_24], %43 {strides = array<i32>} : memref<1x3x40x128xf32, #tpu.memory_space<vmem>>, vector<1x1x40x128xf32>,
    %c0_25 = arith.constant 0 : index
    %c2_26 = arith.constant 2 : index
    %c0_27 = arith.constant 0 : index
    %c0_28 = arith.constant 0 : index
    %44 = vector.load %arg4[%c0_25, %c2_26, %c0_27, %c0_28] : memref<1x3x40x128xf32, #tpu.memory_space<vmem>>, vector<1x1x40x128xf32>
    %45 = vector.shape_cast %44 : vector<1x1x40x128xf32> to vector<40x128xf32>
    %46 = vector.shape_cast %37 : vector<40x128xf32> to vector<1x1x40x128xf32>
    tpu.vector_store %arg4[%c0_25, %c2_26, %c0_27, %c0_28], %46 {strides = array<i32>} : memref<1x3x40x128xf32, #tpu.memory_space<vmem>>, vector<1x1x40x128xf32>,
    return
  }
  func.func @transform_0(%arg0: i32, %arg1: i32) -> (i32, i32, i32) {
    %c1_i32 = arith.constant 1 : i32
    %0 = arith.muli %arg0, %c1_i32 : i32
    %1 = arith.addi %0, %arg1 : i32
    %c0_i32 = arith.constant 0 : i32
    %c0_i32_0 = arith.constant 0 : i32
    %c0_i32_1 = arith.constant 0 : i32
    return %1, %c0_i32, %c0_i32_0 : i32, i32, i32
  }
  func.func @transform_1(%arg0: i32, %arg1: i32) -> (i32, i32) {
    %c0_i32 = arith.constant 0 : i32
    %c0_i32_0 = arith.constant 0 : i32
    %c0_i32_1 = arith.constant 0 : i32
    return %c0_i32, %c0_i32_0 : i32, i32
  }
  func.func @transform_2(%arg0: i32, %arg1: i32) -> (i32, i32, i32, i32) {
    %c0_i32 = arith.constant 0 : i32
    %c0_i32_0 = arith.constant 0 : i32
    %c0_i32_1 = arith.constant 0 : i32
    %c0_i32_2 = arith.constant 0 : i32
    return %arg0, %c0_i32, %c0_i32_0, %c0_i32_1 : i32, i32, i32, i32
  }
}

module attributes {stable_mosaic.version = 11 : i64} {
  func.func @_spec_dist_kernel(%arg0: i32, %arg1: i32, %arg2: memref<1x144x32xbf16, #tpu.memory_space<vmem>>, %arg3: memref<32x256xbf16, #tpu.memory_space<vmem>>, %arg4: memref<1x3x72x128xf32, #tpu.memory_space<vmem>>) attributes {dimension_semantics = [#tpu.dimension_semantics<parallel>, #tpu.dimension_semantics<arbitrary>], iteration_bounds = array<i64: 2, 1>, scalar_prefetch = 0 : i64, scratch_operands = 0 : i64, tpu.core_type = #tpu.core_type<tc>, window_params = [{transform_indices = @transform_0, window_bounds = array<i64: 1, 144, 32>}, {pipeline_mode = #tpu.pipeline_mode<synchronous>, transform_indices = @transform_1, window_bounds = array<i64: 32, 256>}, {transform_indices = @transform_2, window_bounds = array<i64: 1, 3, 72, 128>}]} {
    %c0_i32 = arith.constant 0 : i32
    %0 = arith.cmpi eq, %arg1, %c0_i32 : i32
    %1 = arith.extui %0 : i1 to i32
    %c0_i32_0 = arith.constant 0 : i32
    %2 = arith.cmpi ne, %1, %c0_i32_0 : i32
    scf.if %2 {
      %cst_29 = arith.constant 0.000000e+00 : f32
      %47 = vector.broadcast %cst_29 : f32 to vector<1x3x72x128xf32>
      %c0_30 = arith.constant 0 : index
      %c0_31 = arith.constant 0 : index
      %c0_32 = arith.constant 0 : index
      %c0_33 = arith.constant 0 : index
      %48 = vector.load %arg4[%c0_30, %c0_31, %c0_32, %c0_33] : memref<1x3x72x128xf32, #tpu.memory_space<vmem>>, vector<1x3x72x128xf32>
      tpu.vector_store %arg4[%c0_30, %c0_31, %c0_32, %c0_33], %47 {strides = array<i32>} : memref<1x3x72x128xf32, #tpu.memory_space<vmem>>, vector<1x3x72x128xf32>,
    } else {
    }
    %c0 = arith.constant 0 : index
    %c0_1 = arith.constant 0 : index
    %c0_2 = arith.constant 0 : index
    %3 = vector.load %arg2[%c0, %c0_1, %c0_2] : memref<1x144x32xbf16, #tpu.memory_space<vmem>>, vector<1x144x32xbf16>
    %4 = vector.shape_cast %3 : vector<1x144x32xbf16> to vector<144x32xbf16>
    %c0_3 = arith.constant 0 : index
    %c0_4 = arith.constant 0 : index
    %5 = vector.load %arg3[%c0_3, %c0_4] : memref<32x256xbf16, #tpu.memory_space<vmem>>, vector<32x256xbf16>
    %cst = arith.constant dense<0.000000e+00> : vector<144x256xf32>
    %6 = tpu.matmul %4, %5, %cst {dimension_numbers = #tpu.dot_dimension_numbers<[1], [0], [0], [1], [0, 0, 1, 1], [], []>} : vector<144x32xbf16>, vector<32x256xbf16>, vector<144x256xf32> -> vector<144x256xf32>
    %c0_5 = arith.constant 0 : index
    %c0_6 = arith.constant 0 : index
    %c0_7 = arith.constant 0 : index
    %c0_8 = arith.constant 0 : index
    %7 = vector.load %arg4[%c0_5, %c0_6, %c0_7, %c0_8] : memref<1x3x72x128xf32, #tpu.memory_space<vmem>>, vector<1x1x72x128xf32>
    %8 = vector.shape_cast %7 : vector<1x1x72x128xf32> to vector<72x128xf32>
    %c0_9 = arith.constant 0 : index
    %c1 = arith.constant 1 : index
    %c0_10 = arith.constant 0 : index
    %c0_11 = arith.constant 0 : index
    %9 = vector.load %arg4[%c0_9, %c1, %c0_10, %c0_11] : memref<1x3x72x128xf32, #tpu.memory_space<vmem>>, vector<1x1x72x128xf32>
    %10 = vector.shape_cast %9 : vector<1x1x72x128xf32> to vector<72x128xf32>
    %c0_12 = arith.constant 0 : index
    %c2 = arith.constant 2 : index
    %c0_13 = arith.constant 0 : index
    %c0_14 = arith.constant 0 : index
    %11 = vector.load %arg4[%c0_12, %c2, %c0_13, %c0_14] : memref<1x3x72x128xf32, #tpu.memory_space<vmem>>, vector<1x1x72x128xf32>
    %12 = vector.shape_cast %11 : vector<1x1x72x128xf32> to vector<72x128xf32>
    %13 = vector.extract_strided_slice %6 {offsets = [0, 0], sizes = [72, 128], strides = [1, 1]} : vector<144x256xf32> to vector<72x128xf32>
    %14 = vector.extract_strided_slice %6 {offsets = [0, 128], sizes = [72, 128], strides = [1, 1]} : vector<144x256xf32> to vector<72x128xf32>
    %15 = vector.extract_strided_slice %6 {offsets = [72, 0], sizes = [72, 128], strides = [1, 1]} : vector<144x256xf32> to vector<72x128xf32>
    %16 = vector.extract_strided_slice %6 {offsets = [72, 128], sizes = [72, 128], strides = [1, 1]} : vector<144x256xf32> to vector<72x128xf32>
    %17 = arith.mulf %13, %13 : vector<72x128xf32>
    %18 = arith.mulf %14, %14 : vector<72x128xf32>
    %19 = arith.addf %17, %18 : vector<72x128xf32>
    %20 = arith.mulf %15, %15 : vector<72x128xf32>
    %21 = arith.mulf %16, %16 : vector<72x128xf32>
    %22 = arith.addf %20, %21 : vector<72x128xf32>
    %23 = math.sqrt %19 : vector<72x128xf32>
    %24 = math.sqrt %22 : vector<72x128xf32>
    %25 = arith.subf %23, %24 : vector<72x128xf32>
    %26 = arith.mulf %25, %25 : vector<72x128xf32>
    %27 = arith.addf %8, %26 : vector<72x128xf32>
    %28 = arith.addf %10, %19 : vector<72x128xf32>
    %cst_15 = arith.constant 1.000000e-07 : f32
    %29 = vector.broadcast %cst_15 : f32 to vector<72x128xf32>
    %30 = arith.addf %23, %29 : vector<72x128xf32>
    %31 = math.log %30 : vector<72x128xf32>
    %cst_16 = arith.constant 1.000000e-07 : f32
    %32 = vector.broadcast %cst_16 : f32 to vector<72x128xf32>
    %33 = arith.addf %24, %32 : vector<72x128xf32>
    %34 = math.log %33 : vector<72x128xf32>
    %35 = arith.subf %31, %34 : vector<72x128xf32>
    %36 = math.absf %35 : vector<72x128xf32>
    %37 = arith.addf %12, %36 : vector<72x128xf32>
    %c0_17 = arith.constant 0 : index
    %c0_18 = arith.constant 0 : index
    %c0_19 = arith.constant 0 : index
    %c0_20 = arith.constant 0 : index
    %38 = vector.load %arg4[%c0_17, %c0_18, %c0_19, %c0_20] : memref<1x3x72x128xf32, #tpu.memory_space<vmem>>, vector<1x1x72x128xf32>
    %39 = vector.shape_cast %38 : vector<1x1x72x128xf32> to vector<72x128xf32>
    %40 = vector.shape_cast %27 : vector<72x128xf32> to vector<1x1x72x128xf32>
    tpu.vector_store %arg4[%c0_17, %c0_18, %c0_19, %c0_20], %40 {strides = array<i32>} : memref<1x3x72x128xf32, #tpu.memory_space<vmem>>, vector<1x1x72x128xf32>,
    %c0_21 = arith.constant 0 : index
    %c1_22 = arith.constant 1 : index
    %c0_23 = arith.constant 0 : index
    %c0_24 = arith.constant 0 : index
    %41 = vector.load %arg4[%c0_21, %c1_22, %c0_23, %c0_24] : memref<1x3x72x128xf32, #tpu.memory_space<vmem>>, vector<1x1x72x128xf32>
    %42 = vector.shape_cast %41 : vector<1x1x72x128xf32> to vector<72x128xf32>
    %43 = vector.shape_cast %28 : vector<72x128xf32> to vector<1x1x72x128xf32>
    tpu.vector_store %arg4[%c0_21, %c1_22, %c0_23, %c0_24], %43 {strides = array<i32>} : memref<1x3x72x128xf32, #tpu.memory_space<vmem>>, vector<1x1x72x128xf32>,
    %c0_25 = arith.constant 0 : index
    %c2_26 = arith.constant 2 : index
    %c0_27 = arith.constant 0 : index
    %c0_28 = arith.constant 0 : index
    %44 = vector.load %arg4[%c0_25, %c2_26, %c0_27, %c0_28] : memref<1x3x72x128xf32, #tpu.memory_space<vmem>>, vector<1x1x72x128xf32>
    %45 = vector.shape_cast %44 : vector<1x1x72x128xf32> to vector<72x128xf32>
    %46 = vector.shape_cast %37 : vector<72x128xf32> to vector<1x1x72x128xf32>
    tpu.vector_store %arg4[%c0_25, %c2_26, %c0_27, %c0_28], %46 {strides = array<i32>} : memref<1x3x72x128xf32, #tpu.memory_space<vmem>>, vector<1x1x72x128xf32>,
    return
  }
  func.func @transform_0(%arg0: i32, %arg1: i32) -> (i32, i32, i32) {
    %c1_i32 = arith.constant 1 : i32
    %0 = arith.muli %arg0, %c1_i32 : i32
    %1 = arith.addi %0, %arg1 : i32
    %c0_i32 = arith.constant 0 : i32
    %c0_i32_0 = arith.constant 0 : i32
    %c0_i32_1 = arith.constant 0 : i32
    return %1, %c0_i32, %c0_i32_0 : i32, i32, i32
  }
  func.func @transform_1(%arg0: i32, %arg1: i32) -> (i32, i32) {
    %c0_i32 = arith.constant 0 : i32
    %c0_i32_0 = arith.constant 0 : i32
    %c0_i32_1 = arith.constant 0 : i32
    return %c0_i32, %c0_i32_0 : i32, i32
  }
  func.func @transform_2(%arg0: i32, %arg1: i32) -> (i32, i32, i32, i32) {
    %c0_i32 = arith.constant 0 : i32
    %c0_i32_0 = arith.constant 0 : i32
    %c0_i32_1 = arith.constant 0 : i32
    %c0_i32_2 = arith.constant 0 : i32
    return %arg0, %c0_i32, %c0_i32_0, %c0_i32_1 : i32, i32, i32, i32
  }
}

</mosaic_0001>

<bundles_post_ra>
// kernel: _lambda_.3
= control target key start
LH: loop header
LB: loop body
LE: loop exit
PB: predicated region body
PF: predicated region fallthrough
CT: control target
= control target key end

     0   :  { %s805_s9 = smov 0   ;;  %s807_s10 = smov 0   ;;  %s996_s0 = inlined_call_operand.vmem [shape: bf16[2,80,64], index: 0, kind: input, shape index: {}]   ;;  %s997_s1 = inlined_call_operand.vmem [shape: bf16[64,256], index: 1, kind: input, shape index: {}]   ;;  %s998_s2 = inlined_call_operand.vmem [shape: f32[2,3,40,128], index: 2, kind: output, shape index: {}]  }
   0x1   :  { %s809_s11 = smov 0  }
   0x2 LB: > { %s24_s12 = sadd.s32 1, %s783_s10  ;;  %p629_p0 = scmp.ge.s32.totalorder %s787_s11, 1  ;;  %s787_s11 = sphi %s809_s11, %s12_s11   ;;  %s783_s10 = sphi %s807_s10, %s1000_s10   ;;  %s779_s9 = sphi %s805_s9, %s999_s9  }
   0x3   : > { %p26_p1 = scmp.ge.s32.totalorder %s24_s12, 2  ;;  %p128_p2 = scmp.lt.s32.totalorder %s787_s11, 3 }
   0x5   : > { %s1002_s12 = smov (%p26_p1, %s24_s12), 0  ;;  %p129_p3 = pnand %p629_p0, %p128_p2 }
   0x6   : > { %p152_p4 = scmp.lt.s32.totalorder (!%p129_p3), %s779_s9, 1 }
   0x7   : > { %132 = sbr.rel (%p129_p3) target bundleno = 290 (0x122), region = 28 }
   0xc   : > { %v708_v0 = vld [vmem:[%s997_s1 + $0x34] ss:$8 sps:$4 sm:$0xff]   ;;  %v710_v1 = vld [vmem:[%s997_s1 + $0x30] ss:$8 sps:$4 sm:$0xff]   ;;  %v789_v2 = vmov 0   ;;  %s1004_s9 = smov (!%p152_p4, %s779_s9), 1 }
   0xd   : > { %314 = vmatprep.mubr.bf16.mxu0 %v789_v2  ;;  %344 = vmatprep.mubr.bf16.mxu1 %v789_v2  ;;  %v711_v3 = vld [vmem:[%s997_s1 + $0x24] ss:$8 sps:$4 sm:$0xff]   ;;  %v713_v4 = vld [vmem:[%s997_s1 + $0x20] ss:$8 sps:$4 sm:$0xff]   ;;  %v714_v5 = vld [vmem:[%s997_s1 + $0x14] ss:$8 sps:$4 sm:$0xff]  }
   0xe   : > { %290 = vmatprep.subr.bf16.mxu0 %v708_v0  ;;  %672 = vmatprep.subr.bf16.mxu1 %v708_v0  ;;  %s680_s23 = smul.u32 40, %s1004_s9  ;;  %v716_v6 = vld [vmem:[%s997_s1 + $0x10] ss:$8 sps:$4 sm:$0xff]   ;;  %v717_v7 = vld [vmem:[%s997_s1 + $0x4] ss:$8 sps:$4 sm:$0xff]   ;;  %vm266_vm0 = vcmask 523264  }
   0xf   : > { %291 = vmatpush1.bf16.msra.mxu0 %v710_v1  ;;  %676 = vmatpush1.bf16.msra.mxu1 %v710_v1  ;;  %v719_v8 = vld [vmem:[%s997_s1] ss:$8 sps:$4 sm:$0xff]   ;;  %s681_s5 = smul.u32 120, %s1004_s9 }
  0x10   : > { %292 = vmatprep.subr.bf16.mxu0 %v711_v3  ;;  %673 = vmatprep.subr.bf16.mxu1 %v711_v3  ;;  %s156_s26 = scalar_lea.vmem %s996_s0, %s680_s23 }
  0x11   : > { %v720_v9 = vld [vmem:[%s156_s26] sm:$0xff]   ;;  %v721_v10 = vld [vmem:[%s156_s26 + $0x18] sm:$0xff]   ;;  %v722_v11 = vld [vmem:[%s156_s26 + $0x8] sm:$0xff]   ;;  %s861_s8 = scalar_lea.vmem %s998_s2, %s681_s5 }
  0x12   : > { %v723_v12 = vld [vmem:[%s156_s26 + $0x20] sm:$0xff]   ;;  %v724_v13 = vld [vmem:[%s156_s26 + $0x10] sm:$0xff]  }
  0x13   : > { %293 = vmatpush1.bf16.msra.mxu0 %v713_v4  ;;  %677 = vmatpush1.bf16.msra.mxu1 %v713_v4 }
  0x14   : > { %294 = vmatprep.subr.bf16.mxu0 %v714_v5  ;;  %674 = vmatprep.subr.bf16.mxu1 %v714_v5 }
  0x17   : > { %295 = vmatpush1.bf16.msra.mxu0 %v716_v6  ;;  %678 = vmatpush1.bf16.msra.mxu1 %v716_v6 }
  0x18   : > { %296 = vmatprep.subr.bf16.mxu0 %v717_v7  ;;  %675 = vmatprep.subr.bf16.mxu1 %v717_v7 }
  0x1b   : > { %297 = vmatpush1.bf16.msra.mxu0 %v719_v8  ;;  %679 = vmatpush1.bf16.msra.mxu1 %v719_v8 }
  0x1e   : > { %645 = vmatmul.mubr.msk.bf16.vlgmr.msra.gmra.mxu0 %vm266_vm0, %v720_v9  ;;  %648 = vmatmul.mubr.msk.bf16.vlgmr.msra.gmra.mxu1 %vm266_vm0, %v721_v10 }
  0x1f   : > { %324 = vmatprep.mubr.bf16.mxu0 %v789_v2  ;;  %354 = vmatprep.mubr.bf16.mxu1 %v789_v2 }
  0x26   : > { %646 = vmatmul.mubr.msk.bf16.gmra.mxu0 %vm266_vm0, %v722_v11  ;;  %649 = vmatmul.mubr.msk.bf16.gmra.mxu1 %vm266_vm0, %v723_v12 }
  0x27   : > { %334 = vmatprep.mubr.bf16.mxu0 %v789_v2 }
  0x2e   : > { %647 = vmatmul.mubr.msk.bf16.gmra.mxu0 %vm266_vm0, %v724_v13 }
  0xde   : > { %v316_v14 = vpop.f32.mrf.mxu0  ;;  %v346_v15 = vpop.f32.mrf.mxu1 }
  0xdf   : > { %v398_v16 = vmul.f32 %v346_v15, %v346_v15  ;;  %v382_v19 = vmul.f32 %v316_v14, %v316_v14 }
  0xe0   : > { %v318_v17 = vpop.f32.mrf.mxu0  ;;  %v348_v18 = vpop.f32.mrf.mxu1 }
  0xe1   : > { %v387_v20 = vmul.f32 %v318_v17, %v318_v17  ;;  %v403_v21 = vmul.f32 %v348_v18, %v348_v18 }
  0xe2   : > { %v320_v22 = vpop.f32.mrf.mxu0  ;;  %v350_v23 = vpop.f32.mrf.mxu1 }
  0xe3   : > { %v854_v24 = vadd.f32 %v387_v20, %v382_v19  ;;  %v856_v25 = vadd.f32 %v403_v21, %v398_v16  ;;  %v399_v28 = vmul.f32 %v350_v23, %v350_v23  ;;  %v383_v31 = vmul.f32 %v320_v22, %v320_v22 }
  0xe4   : > { %v322_v26 = vpop.f32.mrf.mxu0  ;;  %v352_v27 = vpop.f32.mrf.mxu1 }
  0xe5   : > { %725 = vrsqrt.f32 %v856_v25  ;;  %660 = vst [vmem:[%s861_s8 + $0x28] sm:$0xff] %v854_v24  ;;  %v388_v32 = vmul.f32 %v322_v26, %v322_v26  ;;  %v404_v33 = vmul.f32 %v352_v27, %v352_v27  ;;  %v417_v59 = vand.u32 2147483648, %v854_v24 }
  0xe6   : > { %v326_v29 = vpop.f32.mrf.mxu0  ;;  %v356_v30 = vpop.f32.mrf.mxu1  ;;  %727 = vrsqrt.f32 %v854_v24  ;;  %vm456_vm1 = vcmp.eq.f32.partialorder %v856_v25, inf  ;;  %vm458_vm2 = vcmp.eq.f32.partialorder %v856_v25, 0.0  ;;  %v459_v63 = vand.u32 2147483648, %v856_v25 }
  0xe7   : > { %v400_v34 = vmul.f32 %v356_v30, %v356_v30  ;;  %v866_v37 = vadd.f32 %v388_v32, %v383_v31  ;;  %v868_v38 = vadd.f32 %v404_v33, %v399_v28  ;;  %v384_v43 = vmul.f32 %v326_v29, %v326_v29 }
  0xe8   : > { %v328_v35 = vpop.f32.mrf.mxu0  ;;  %v358_v36 = vpop.f32.mrf.mxu1  ;;  %vm414_vm5 = vcmp.eq.f32.partialorder %v854_v24, inf  ;;  %vm416_vm12 = vcmp.eq.f32.partialorder %v854_v24, 0.0 }
  0xe9   : > { %v389_v39 = vmul.f32 %v328_v35, %v328_v35  ;;  %v405_v40 = vmul.f32 %v358_v36, %v358_v36  ;;  %729 = vrsqrt.f32 %v866_v37  ;;  %661 = vst [vmem:[%s861_s8 + $0x30] sm:$0xff] %v866_v37  ;;  %vm421_vm3 = vcmp.eq.f32.partialorder %v866_v37, inf }
  0xea   : > { %v330_v41 = vpop.f32.mrf.mxu0  ;;  %v360_v42 = vpop.f32.mrf.mxu1  ;;  %731 = vrsqrt.f32 %v868_v38  ;;  %vm423_vm4 = vcmp.eq.f32.partialorder %v866_v37, 0.0  ;;  %v424_v6 = vand.u32 2147483648, %v866_v37  ;;  %vm463_vm6 = vcmp.eq.f32.partialorder %v868_v38, inf }
  0xeb   : > { %v873_v46 = vadd.f32 %v389_v39, %v384_v43  ;;  %v875_v47 = vadd.f32 %v405_v40, %v400_v34  ;;  %v401_v48 = vmul.f32 %v360_v42, %v360_v42  ;;  %v385_v52 = vmul.f32 %v330_v41, %v330_v41 }
  0xec   : > { %v332_v44 = vpop.f32.mrf.mxu0  ;;  %v362_v45 = vpop.f32.mrf.mxu1  ;;  %vm465_vm7 = vcmp.eq.f32.partialorder %v868_v38, 0.0  ;;  %v466_v12 = vand.u32 2147483648, %v868_v38 }
  0xed   : > { %v390_v49 = vmul.f32 %v332_v44, %v332_v44  ;;  %v406_v50 = vmul.f32 %v362_v45, %v362_v45  ;;  %733 = vrsqrt.f32 %v873_v46  ;;  %662 = vst [vmem:[%s861_s8 + $0x38] sm:$0xff] %v873_v46  ;;  %vm428_vm8 = vcmp.eq.f32.partialorder %v873_v46, inf }
  0xee   : > { %v336_v51 = vpop.f32.mrf.mxu0  ;;  %735 = vrsqrt.f32 %v875_v47  ;;  %vm430_vm9 = vcmp.eq.f32.partialorder %v873_v46, 0.0  ;;  %v431_v14 = vand.u32 2147483648, %v873_v46  ;;  %vm470_vm10 = vcmp.eq.f32.partialorder %v875_v47, inf }
  0xef   : > { %v881_v54 = vadd.f32 %v390_v49, %v385_v52  ;;  %v883_v55 = vadd.f32 %v406_v50, %v401_v48  ;;  %v386_v60 = vmul.f32 %v336_v51, %v336_v51  ;;  %vm472_vm11 = vcmp.eq.f32.partialorder %v875_v47, 0.0 }
  0xf0   : > { %v338_v53 = vpop.f32.mrf.mxu0  ;;  %v473_v17 = vand.u32 2147483648, %v875_v47 }
  0xf1   : > { %v391_v56 = vmul.f32 %v338_v53, %v338_v53  ;;  %737 = vrsqrt.f32 %v881_v54  ;;  %663 = vst [vmem:[%s861_s8 + $0x40] sm:$0xff] %v881_v54  ;;  %vm435_vm13 = vcmp.eq.f32.partialorder %v881_v54, inf  ;;  %vm437_vm14 = vcmp.eq.f32.partialorder %v881_v54, 0.0 }
  0xf2   : > { %v340_v57 = vpop.f32.mrf.mxu0  ;;  %v726_v58 = vpop.eup %725  ;;  %739 = vrsqrt.f32 %v883_v55  ;;  %v438_v29 = vand.u32 2147483648, %v881_v54  ;;  %vm477_vm15 = vcmp.eq.f32.partialorder %v883_v55, inf  ;;  %vm479_vm0 = vcmp.eq.f32.partialorder %v883_v55, 0.0 }
  0xf3   : > { %v455_v61 = vmul.f32 %v726_v58, %v856_v25  ;;  %v895_v0 = vadd.f32 %v391_v56, %v386_v60  ;;  %v397_v2 = vmul.f32 %v340_v57, %v340_v57  ;;  %v728_v4 = vpop.eup %727  ;;  %v480_v44 = vand.u32 2147483648, %v883_v55 }
  0xf4   : > { %v342_v62 = vpop.f32.mrf.mxu0  ;;  %v413_v15 = vmul.f32 %v728_v4, %v854_v24 }
  0xf5   : > { %v457_v1 = vsel %vm456_vm1, %v856_v25, %v455_v61  ;;  %v402_v3 = vmul.f32 %v342_v62, %v342_v62  ;;  %741 = vrsqrt.f32 %v895_v0  ;;  %664 = vst [vmem:[%s861_s8 + $0x48] sm:$0xff] %v895_v0  ;;  %vm442_vm1 = vcmp.eq.f32.partialorder %v895_v0, inf }
  0xf6   : > { %v460_v5 = vsel %vm458_vm2, %v459_v63, %v457_v1  ;;  %v730_v7 = vpop.eup %729  ;;  %v415_v35 = vsel %vm414_vm5, %v854_v24, %v413_v15  ;;  %v445_v48 = vand.u32 2147483648, %v895_v0  ;;  %vm444_vm2 = vcmp.eq.f32.partialorder %v895_v0, 0.0 }
  0xf7   : > { %v518_v8 = vadd.f32 1e-07, %v460_v5  ;;  %v906_v9 = vadd.f32 %v402_v3, %v397_v2  ;;  %v732_v10 = vpop.eup %731  ;;  %v420_v11 = vmul.f32 %v730_v7, %v866_v37  ;;  %v418_v49 = vsel %vm416_vm12, %v417_v59, %v415_v35 }
  0xf8   : > { %v462_v13 = vmul.f32 %v732_v10, %v868_v38  ;;  %v502_v59 = vadd.f32 1e-07, %v418_v49 }
  0xf9   : > { %v422_v16 = vsel %vm421_vm3, %v866_v37, %v420_v11  ;;  %743 = vrsqrt.f32 %v906_v9  ;;  %vm449_vm3 = vcmp.eq.f32.partialorder %v906_v9, inf  ;;  %v452_v1 = vand.u32 2147483648, %v906_v9 }
  0xfa   : > { %v734_v18 = vpop.eup %733  ;;  %745 = vlog2.f32 %v518_v8  ;;  %v425_v19 = vsel %vm423_vm4, %v424_v6, %v422_v16  ;;  %v464_v20 = vsel %vm463_vm6, %v868_v38, %v462_v13  ;;  %vm451_vm4 = vcmp.eq.f32.partialorder %v906_v9, 0.0 }
  0xfb   : > { %v736_v21 = vpop.eup %735  ;;  %v483_v22 = vsub.f32 %v425_v19, %v460_v5  ;;  %v503_v23 = vadd.f32 1e-07, %v425_v19  ;;  %v467_v25 = vsel %vm465_vm7, %v466_v12, %v464_v20  ;;  %v427_v26 = vmul.f32 %v734_v18, %v873_v46 }
  0xfc   : > { %v519_v27 = vadd.f32 1e-07, %v467_v25  ;;  %v469_v28 = vmul.f32 %v736_v21, %v875_v47 }
  0xfd   : > { %v488_v30 = vmul.f32 %v483_v22, %v483_v22  ;;  %747 = vlog2.f32 %v503_v23  ;;  %v429_v31 = vsel %vm428_vm8, %v873_v46, %v427_v26 }
  0xfe   : > { %v738_v32 = vpop.eup %737  ;;  %749 = vlog2.f32 %v519_v27  ;;  %v432_v33 = vsel %vm430_vm9, %v431_v14, %v429_v31  ;;  %v471_v34 = vsel %vm470_vm10, %v875_v47, %v469_v28 }
  0xff   : > { %v740_v36 = vpop.eup %739  ;;  %v484_v37 = vsub.f32 %v432_v33, %v467_v25  ;;  %v504_v38 = vadd.f32 1e-07, %v432_v33  ;;  %v474_v39 = vsel %vm472_vm11, %v473_v17, %v471_v34  ;;  %v434_v41 = vmul.f32 %v738_v32, %v881_v54  ;;  %548 = vst [vmem:[%s861_s8 + $0x8] sm:$0xff] %v488_v30 }
 0x100   : > { %v520_v40 = vadd.f32 1e-07, %v474_v39  ;;  %v476_v42 = vmul.f32 %v740_v36, %v883_v55 }
 0x101   : > { %v489_v43 = vmul.f32 %v484_v37, %v484_v37  ;;  %751 = vlog2.f32 %v504_v38  ;;  %v436_v46 = vsel %vm435_vm13, %v881_v54, %v434_v41 }
 0x102   : > { %v742_v45 = vpop.eup %741  ;;  %v478_v47 = vsel %vm477_vm15, %v883_v55, %v476_v42  ;;  %v439_v50 = vsel %vm437_vm14, %v438_v29, %v436_v46  ;;  %753 = vlog2.f32 %v520_v40 }
 0x103   : > { %v481_v51 = vsel %vm479_vm0, %v480_v44, %v478_v47  ;;  %v441_v52 = vmul.f32 %v742_v45, %v895_v0  ;;  %v485_v53 = vsub.f32 %v439_v50, %v474_v39  ;;  %v505_v56 = vadd.f32 1e-07, %v439_v50  ;;  %549 = vst [vmem:[%s861_s8 + $0x10] sm:$0xff] %v489_v43 }
 0x104   : > { %v521_v57 = vadd.f32 1e-07, %v481_v51 }
 0x105   : > { %v443_v55 = vsel %vm442_vm1, %v895_v0, %v441_v52  ;;  %v490_v60 = vmul.f32 %v485_v53, %v485_v53  ;;  %755 = vlog2.f32 %v505_v56 }
 0x106   : > { %v744_v58 = vpop.eup %743  ;;  %v446_v24 = vsel %vm444_vm2, %v445_v48, %v443_v55  ;;  %757 = vlog2.f32 %v521_v57 }
 0x107   : > { %v746_v54 = vpop.eup %745  ;;  %v486_v61 = vsub.f32 %v446_v24, %v481_v51  ;;  %v506_v62 = vadd.f32 1e-07, %v446_v24  ;;  %v448_v63 = vmul.f32 %v744_v58, %v906_v9  ;;  %550 = vst [vmem:[%s861_s8 + $0x18] sm:$0xff] %v490_v60 }
 0x108   : > { %v525_v4 = vmul.f32 0.6931472, %v746_v54 }
 0x109   : > { %v491_v2 = vmul.f32 %v486_v61, %v486_v61  ;;  %759 = vlog2.f32 %v506_v62  ;;  %v450_v0 = vsel %vm449_vm3, %v906_v9, %v448_v63 }
 0x10a   : > { %v748_v3 = vpop.eup %747  ;;  %v453_v5 = vsel %vm451_vm4, %v452_v1, %v450_v0  ;;  %761 = vlog2.f32 %v502_v59 }
 0x10b   : > { %v750_v6 = vpop.eup %749  ;;  %v510_v7 = vmul.f32 0.6931472, %v748_v3  ;;  %v482_v8 = vsub.f32 %v418_v49, %v453_v5  ;;  %v517_v10 = vadd.f32 1e-07, %v453_v5  ;;  %551 = vst [vmem:[%s861_s8 + $0x20] sm:$0xff] %v491_v2 }
 0x10c   : > { %v527_v15 = vmul.f32 0.6931472, %v750_v6 }
 0x10d   : > { %v533_v11 = vsub.f32 %v510_v7, %v525_v4  ;;  %v487_v12 = vmul.f32 %v482_v8, %v482_v8  ;;  %763 = vlog2.f32 %v517_v10 }
 0x10e   : > { %v752_v13 = vpop.eup %751 }
 0x10f   : > { %v538_v14 = vand.u32 2147483647, %v533_v11  ;;  %v512_v9 = vmul.f32 0.6931472, %v752_v13  ;;  %v754_v16 = vpop.eup %753  ;;  %547 = vst [vmem:[%s861_s8] sm:$0xff] %v487_v12 }
 0x110   : > { %v529_v21 = vmul.f32 0.6931472, %v754_v16 }
 0x111   : > { %v534_v17 = vsub.f32 %v512_v9, %v527_v15  ;;  %666 = vst [vmem:[%s861_s8 + $0x58] sm:$0xff] %v538_v14 }
 0x112   : > { %v756_v18 = vpop.eup %755 }
 0x113   : > { %v539_v19 = vand.u32 2147483647, %v534_v17  ;;  %v758_v20 = vpop.eup %757  ;;  %v514_v22 = vmul.f32 0.6931472, %v756_v18 }
 0x114   : > { %v531_v27 = vmul.f32 0.6931472, %v758_v20 }
 0x115   : > { %v535_v25 = vsub.f32 %v514_v22, %v529_v21  ;;  %667 = vst [vmem:[%s861_s8 + $0x60] sm:$0xff] %v539_v19 }
 0x116   : > { %v760_v23 = vpop.eup %759 }
 0x117   : > { %v762_v26 = vpop.eup %761  ;;  %v516_v28 = vmul.f32 0.6931472, %v760_v23  ;;  %v540_v29 = vand.u32 2147483647, %v535_v25 }
 0x118   : > { %v508_v33 = vmul.f32 0.6931472, %v762_v26 }
 0x119   : > { %v536_v30 = vsub.f32 %v516_v28, %v531_v27  ;;  %668 = vst [vmem:[%s861_s8 + $0x68] sm:$0xff] %v540_v29 }
 0x11a   : > { %v764_v31 = vpop.eup %763 }
 0x11b   : > { %v541_v32 = vand.u32 2147483647, %v536_v30  ;;  %v523_v34 = vmul.f32 0.6931472, %v764_v31 }
 0x11d   : > { %v532_v35 = vsub.f32 %v508_v33, %v523_v34  ;;  %669 = vst [vmem:[%s861_s8 + $0x70] sm:$0xff] %v541_v32 }
 0x11f   : > { %v537_v36 = vand.u32 2147483647, %v532_v35 }
 0x121   : > { %665 = vst [vmem:[%s861_s8 + $0x50] sm:$0xff] %v537_v36 }
 0x122 PF: > { %s12_s11 = sadd.s32 1, %s787_s11   ;;  %s999_s9 = smov %s783_s10 }
 0x123   : > { %p9_p5 = scmp.ge.s32.totalorder %s12_s11, 4   ;;  %s1000_s10 = smov %s1002_s12 }
 0x125   :  { %11 = sbr.rel (!%p9_p5) target bundleno = 2 (0x2), region = 64 }

// kernel: _lambda_.2
= control target key start
LH: loop header
LB: loop body
LE: loop exit
PB: predicated region body
PF: predicated region fallthrough
CT: control target
= control target key end

     0   :  { %s1075_s9 = smov 0   ;;  %s1077_s10 = smov 0   ;;  %s1368_s0 = inlined_call_operand.vmem [shape: bf16[2,144,32], index: 0, kind: input, shape index: {}]   ;;  %s1369_s1 = inlined_call_operand.vmem [shape: bf16[32,256], index: 1, kind: input, shape index: {}]   ;;  %s1370_s2 = inlined_call_operand.vmem [shape: f32[2,3,72,128], index: 2, kind: output, shape index: {}]  }
   0x1   :  { %s1079_s11 = smov 0  }
   0x2 LB: > { %s24_s12 = sadd.s32 1, %s1053_s10  ;;  %p853_p0 = scmp.ge.s32.totalorder %s1057_s11, 1  ;;  %s1057_s11 = sphi %s1079_s11, %s12_s11   ;;  %s1053_s10 = sphi %s1077_s10, %s1372_s10   ;;  %s1049_s9 = sphi %s1075_s9, %s1371_s9  }
   0x3   : > { %p26_p1 = scmp.ge.s32.totalorder %s24_s12, 2  ;;  %p128_p2 = scmp.lt.s32.totalorder %s1057_s11, 3 }
   0x5   : > { %s1374_s12 = smov (%p26_p1, %s24_s12), 0  ;;  %p129_p3 = pnand %p853_p0, %p128_p2 }
   0x6   : > { %p152_p4 = scmp.lt.s32.totalorder (!%p129_p3), %s1049_s9, 1 }
   0x7   : > { %132 = sbr.rel (%p129_p3) target bundleno = 317 (0x13d), region = 28 }
   0xc   : > { %v948_v0 = vld [vmem:[%s1369_s1 + $0x14] ss:$8 sps:$4 sm:$0xff]   ;;  %v950_v1 = vld [vmem:[%s1369_s1 + $0x10] ss:$8 sps:$4 sm:$0xff]   ;;  %v1059_v2 = vmov 0   ;;  %s1376_s9 = smov (!%p152_p4, %s1049_s9), 1 }
   0xd   : > { %342 = vmatprep.mubr.bf16.mxu0 %v1059_v2  ;;  %392 = vmatprep.mubr.bf16.mxu1 %v1059_v2  ;;  %v951_v3 = vld [vmem:[%s1369_s1 + $0x4] ss:$8 sps:$4 sm:$0xff]   ;;  %v953_v4 = vld [vmem:[%s1369_s1] ss:$8 sps:$4 sm:$0xff]   ;;  %s920_s21 = smul.u32 72, %s1376_s9  ;;  %vm282_vm0 = vcmask 261120  }
   0xe   : > { %322 = vmatprep.subr.bf16.mxu0 %v948_v0  ;;  %916 = vmatprep.subr.bf16.mxu1 %v948_v0  ;;  %s921_s25 = smul.u32 216, %s1376_s9 }
   0xf   : > { %323 = vmatpush1.bf16.msra.mxu0 %v950_v1  ;;  %918 = vmatpush1.bf16.msra.mxu1 %v950_v1  ;;  %s156_s24 = scalar_lea.vmem %s1368_s0, %s920_s21 }
  0x10   : > { %324 = vmatprep.subr.bf16.mxu0 %v951_v3  ;;  %917 = vmatprep.subr.bf16.mxu1 %v951_v3  ;;  %v954_v5 = vld [vmem:[%s156_s24] sm:$0xff]   ;;  %v955_v6 = vld [vmem:[%s156_s24 + $0x28] sm:$0xff]   ;;  %v957_v8 = vld [vmem:[%s156_s24 + $0x30] sm:$0xff]   ;;  %s1128_s28 = scalar_lea.vmem %s1370_s2, %s921_s25 }
  0x11   : > { %v956_v7 = vld [vmem:[%s156_s24 + $0x8] sm:$0xff]   ;;  %v958_v9 = vld [vmem:[%s156_s24 + $0x10] sm:$0xff]   ;;  %v959_v10 = vld [vmem:[%s156_s24 + $0x38] sm:$0xff]  }
  0x12   : > { %v960_v11 = vld [vmem:[%s156_s24 + $0x18] sm:$0xff]   ;;  %v961_v12 = vld [vmem:[%s156_s24 + $0x40] sm:$0xff]  }
  0x13   : > { %325 = vmatpush1.bf16.msra.mxu0 %v953_v4  ;;  %919 = vmatpush1.bf16.msra.mxu1 %v953_v4  ;;  %v962_v13 = vld [vmem:[%s156_s24 + $0x20] sm:$0xff]  }
  0x16   : > { %869 = vmatmul.mubr.msk.bf16.vlgmr.msra.gmra.mxu0 %vm282_vm0, %v954_v5  ;;  %874 = vmatmul.mubr.msk.bf16.vlgmr.msra.gmra.mxu1 %vm282_vm0, %v955_v6 }
  0x17   : > { %352 = vmatprep.mubr.bf16.mxu0 %v1059_v2  ;;  %402 = vmatprep.mubr.bf16.mxu1 %v1059_v2 }
  0x1e   : > { %870 = vmatmul.mubr.msk.bf16.gmra.mxu0 %vm282_vm0, %v956_v7  ;;  %875 = vmatmul.mubr.msk.bf16.gmra.mxu1 %vm282_vm0, %v957_v8 }
  0x1f   : > { %362 = vmatprep.mubr.bf16.mxu0 %v1059_v2  ;;  %412 = vmatprep.mubr.bf16.mxu1 %v1059_v2 }
  0x26   : > { %871 = vmatmul.mubr.msk.bf16.gmra.mxu0 %vm282_vm0, %v958_v9  ;;  %876 = vmatmul.mubr.msk.bf16.gmra.mxu1 %vm282_vm0, %v959_v10 }
  0x27   : > { %372 = vmatprep.mubr.bf16.mxu0 %v1059_v2  ;;  %422 = vmatprep.mubr.bf16.mxu1 %v1059_v2 }
  0x2e   : > { %872 = vmatmul.mubr.msk.bf16.gmra.mxu0 %vm282_vm0, %v960_v11  ;;  %877 = vmatmul.mubr.msk.bf16.gmra.mxu1 %vm282_vm0, %v961_v12 }
  0x2f   : > { %382 = vmatprep.mubr.bf16.mxu0 %v1059_v2 }
  0x36   : > { %873 = vmatmul.mubr.msk.bf16.gmra.mxu0 %vm282_vm0, %v962_v13 }
  0xd6   : > { %v344_v14 = vpop.f32.mrf.mxu0  ;;  %v394_v15 = vpop.f32.mrf.mxu1 }
  0xd7   : > { %v490_v16 = vmul.f32 %v394_v15, %v394_v15  ;;  %v462_v19 = vmul.f32 %v344_v14, %v344_v14 }
  0xd8   : > { %v346_v17 = vpop.f32.mrf.mxu0  ;;  %v396_v18 = vpop.f32.mrf.mxu1 }
  0xd9   : > { %v471_v20 = vmul.f32 %v346_v17, %v346_v17  ;;  %v499_v21 = vmul.f32 %v396_v18, %v396_v18 }
  0xda   : > { %v348_v22 = vpop.f32.mrf.mxu0  ;;  %v398_v23 = vpop.f32.mrf.mxu1 }
  0xdb   : > { %v1121_v24 = vadd.f32 %v471_v20, %v462_v19  ;;  %v1123_v25 = vadd.f32 %v499_v21, %v490_v16  ;;  %v491_v28 = vmul.f32 %v398_v23, %v398_v23  ;;  %v463_v31 = vmul.f32 %v348_v22, %v348_v22 }
  0xdc   : > { %v350_v26 = vpop.f32.mrf.mxu0  ;;  %v400_v27 = vpop.f32.mrf.mxu1 }
  0xdd   : > { %963 = vrsqrt.f32 %v1123_v25  ;;  %896 = vst [vmem:[%s1128_s28 + $0x48] sm:$0xff] %v1121_v24  ;;  %v472_v32 = vmul.f32 %v350_v26, %v350_v26  ;;  %v500_v33 = vmul.f32 %v400_v27, %v400_v27  ;;  %vm588_vm1 = vcmp.eq.f32.partialorder %v1123_v25, inf }
  0xde   : > { %v354_v29 = vpop.f32.mrf.mxu0  ;;  %v404_v30 = vpop.f32.mrf.mxu1  ;;  %vm590_vm2 = vcmp.eq.f32.partialorder %v1123_v25, 0.0  ;;  %v591_v62 = vand.u32 2147483648, %v1123_v25 }
  0xdf   : > { %v492_v34 = vmul.f32 %v404_v30, %v404_v30  ;;  %v1133_v37 = vadd.f32 %v472_v32, %v463_v31  ;;  %v1135_v38 = vadd.f32 %v500_v33, %v491_v28  ;;  %v464_v43 = vmul.f32 %v354_v29, %v354_v29 }
  0xe0   : > { %v356_v35 = vpop.f32.mrf.mxu0  ;;  %v406_v36 = vpop.f32.mrf.mxu1 }
  0xe1   : > { %v473_v39 = vmul.f32 %v356_v35, %v356_v35  ;;  %v501_v40 = vmul.f32 %v406_v36, %v406_v36  ;;  %965 = vrsqrt.f32 %v1133_v37  ;;  %897 = vst [vmem:[%s1128_s28 + $0x50] sm:$0xff] %v1133_v37  ;;  %vm525_vm3 = vcmp.eq.f32.partialorder %v1133_v37, inf }
  0xe2   : > { %v358_v41 = vpop.f32.mrf.mxu0  ;;  %v408_v42 = vpop.f32.mrf.mxu1  ;;  %967 = vrsqrt.f32 %v1135_v38  ;;  %vm527_vm4 = vcmp.eq.f32.partialorder %v1133_v37, 0.0  ;;  %v528_v2 = vand.u32 2147483648, %v1133_v37  ;;  %vm595_vm5 = vcmp.eq.f32.partialorder %v1135_v38, inf }
  0xe3   : > { %v1139_v46 = vadd.f32 %v473_v39, %v464_v43  ;;  %v1141_v47 = vadd.f32 %v501_v40, %v492_v34  ;;  %v493_v48 = vmul.f32 %v408_v42, %v408_v42  ;;  %v465_v53 = vmul.f32 %v358_v41, %v358_v41 }
  0xe4   : > { %v360_v44 = vpop.f32.mrf.mxu0  ;;  %v410_v45 = vpop.f32.mrf.mxu1  ;;  %vm597_vm6 = vcmp.eq.f32.partialorder %v1135_v38, 0.0  ;;  %v598_v5 = vand.u32 2147483648, %v1135_v38 }
  0xe5   : > { %v474_v49 = vmul.f32 %v360_v44, %v360_v44  ;;  %v502_v50 = vmul.f32 %v410_v45, %v410_v45  ;;  %969 = vrsqrt.f32 %v1139_v46  ;;  %898 = vst [vmem:[%s1128_s28 + $0x58] sm:$0xff] %v1139_v46  ;;  %vm532_vm7 = vcmp.eq.f32.partialorder %v1139_v46, inf }
  0xe6   : > { %v364_v51 = vpop.f32.mrf.mxu0  ;;  %v414_v52 = vpop.f32.mrf.mxu1  ;;  %971 = vrsqrt.f32 %v1141_v47  ;;  %vm534_vm8 = vcmp.eq.f32.partialorder %v1139_v46, 0.0  ;;  %v535_v11 = vand.u32 2147483648, %v1139_v46  ;;  %vm602_vm9 = vcmp.eq.f32.partialorder %v1141_v47, inf }
  0xe7   : > { %973 = vrsqrt.f32 %v1121_v24  ;;  %v1148_v56 = vadd.f32 %v474_v49, %v465_v53  ;;  %v1150_v57 = vadd.f32 %v502_v50, %v493_v48  ;;  %v494_v58 = vmul.f32 %v414_v52, %v414_v52 }
  0xe8   : > { %v366_v54 = vpop.f32.mrf.mxu0  ;;  %v416_v55 = vpop.f32.mrf.mxu1  ;;  %v466_v63 = vmul.f32 %v364_v51, %v364_v51  ;;  %vm604_vm10 = vcmp.eq.f32.partialorder %v1141_v47, 0.0  ;;  %v605_v15 = vand.u32 2147483648, %v1141_v47 }
  0xe9   : > { %v475_v59 = vmul.f32 %v366_v54, %v366_v54  ;;  %v503_v60 = vmul.f32 %v416_v55, %v416_v55  ;;  %975 = vrsqrt.f32 %v1148_v56  ;;  %899 = vst [vmem:[%s1128_s28 + $0x60] sm:$0xff] %v1148_v56  ;;  %v542_v17 = vand.u32 2147483648, %v1148_v56 }
  0xea   : > { %v964_v61 = vpop.eup %963  ;;  %v368_v0 = vpop.f32.mrf.mxu0  ;;  %977 = vrsqrt.f32 %v1150_v57  ;;  %vm539_vm11 = vcmp.eq.f32.partialorder %v1148_v56, inf  ;;  %vm609_vm12 = vcmp.eq.f32.partialorder %v1150_v57, inf  ;;  %v612_v21 = vand.u32 2147483648, %v1150_v57 }
  0xeb   : > { %v587_v1 = vmul.f32 %v964_v61, %v1123_v25  ;;  %v1164_v3 = vadd.f32 %v475_v59, %v466_v63  ;;  %v1173_v6 = vadd.f32 %v503_v60, %v494_v58  ;;  %v418_v12 = vpop.f32.mrf.mxu1  ;;  %v467_v18 = vmul.f32 %v368_v0, %v368_v0 }
  0xec   : > { %v370_v8 = vpop.f32.mrf.mxu0  ;;  %v495_v22 = vmul.f32 %v418_v12, %v418_v12  ;;  %vm541_vm13 = vcmp.eq.f32.partialorder %v1148_v56, 0.0  ;;  %vm611_vm14 = vcmp.eq.f32.partialorder %v1150_v57, 0.0 }
  0xed   : > { %v589_v4 = vsel %vm588_vm1, %v1123_v25, %v587_v1  ;;  %979 = vrsqrt.f32 %v1164_v3  ;;  %900 = vst [vmem:[%s1128_s28 + $0x68] sm:$0xff] %v1164_v3  ;;  %v476_v19 = vmul.f32 %v370_v8, %v370_v8  ;;  %v420_v29 = vpop.f32.mrf.mxu1  ;;  %vm546_vm15 = vcmp.eq.f32.partialorder %v1164_v3, inf }
  0xee   : > { %v592_v7 = vsel %vm590_vm2, %v591_v62, %v589_v4  ;;  %v966_v9 = vpop.eup %965  ;;  %981 = vrsqrt.f32 %v1173_v6  ;;  %v374_v23 = vpop.f32.mrf.mxu0  ;;  %v549_v39 = vand.u32 2147483648, %v1164_v3  ;;  %vm548_vm0 = vcmp.eq.f32.partialorder %v1164_v3, 0.0 }
  0xef   : > { %v706_v10 = vadd.f32 1e-07, %v592_v7  ;;  %v968_v13 = vpop.eup %967  ;;  %v524_v14 = vmul.f32 %v966_v9, %v1133_v37  ;;  %v1203_v28 = vadd.f32 %v476_v19, %v467_v18  ;;  %v504_v41 = vmul.f32 %v420_v29, %v420_v29  ;;  %v424_v53 = vpop.f32.mrf.mxu1 }
  0xf0   : > { %v594_v16 = vmul.f32 %v968_v13, %v1135_v38  ;;  %v376_v42 = vpop.f32.mrf.mxu0  ;;  %vm616_vm1 = vcmp.eq.f32.partialorder %v1173_v6, inf  ;;  %v619_v48 = vand.u32 2147483648, %v1173_v6  ;;  %vm618_vm2 = vcmp.eq.f32.partialorder %v1173_v6, 0.0 }
  0xf1   : > { %v526_v20 = vsel %vm525_vm3, %v1133_v37, %v524_v14  ;;  %983 = vlog2.f32 %v706_v10  ;;  %v1231_v59 = vadd.f32 %v504_v41, %v495_v22  ;;  %v477_v60 = vmul.f32 %v376_v42, %v376_v42  ;;  %901 = vst [vmem:[%s1128_s28 + $0x70] sm:$0xff] %v1203_v28 }
  0xf2   : > { %v970_v25 = vpop.eup %969  ;;  %v529_v26 = vsel %vm527_vm4, %v528_v2, %v526_v20  ;;  %v596_v27 = vsel %vm595_vm5, %v1135_v38, %v594_v16  ;;  %985 = vrsqrt.f32 %v1203_v28  ;;  %v378_v61 = vpop.f32.mrf.mxu0  ;;  %v468_v0 = vmul.f32 %v374_v23, %v374_v23 }
  0xf3   : > { %v972_v30 = vpop.eup %971  ;;  %v643_v31 = vsub.f32 %v529_v26, %v592_v7  ;;  %v679_v32 = vadd.f32 1e-07, %v529_v26  ;;  %v599_v33 = vsel %vm597_vm6, %v598_v5, %v596_v27  ;;  %v531_v34 = vmul.f32 %v970_v25, %v1139_v46  ;;  %v426_v7 = vpop.f32.mrf.mxu1 }
  0xf4   : > { %v1208_v35 = vpop.eup %973  ;;  %v707_v36 = vadd.f32 1e-07, %v599_v33  ;;  %v601_v37 = vmul.f32 %v972_v30, %v1141_v47  ;;  %v1254_v13 = vadd.f32 %v477_v60, %v468_v0  ;;  %v505_v16 = vmul.f32 %v426_v7, %v426_v7 }
  0xf5   : > { %v652_v40 = vmul.f32 %v643_v31, %v643_v31  ;;  %987 = vlog2.f32 %v679_v32  ;;  %v533_v38 = vsel %vm532_vm7, %v1139_v46, %v531_v34  ;;  %v428_v22 = vpop.f32.mrf.mxu1  ;;  %vm553_vm3 = vcmp.eq.f32.partialorder %v1203_v28, inf }
  0xf6   : > { %v976_v43 = vpop.eup %975  ;;  %989 = vlog2.f32 %v707_v36  ;;  %v536_v44 = vsel %vm534_vm8, %v535_v11, %v533_v38  ;;  %v603_v45 = vsel %vm602_vm9, %v1141_v47, %v601_v37  ;;  %vm555_vm4 = vcmp.eq.f32.partialorder %v1203_v28, 0.0  ;;  %902 = vst [vmem:[%s1128_s28 + $0x78] sm:$0xff] %v1254_v13 }
  0xf7   : > { %v978_v49 = vpop.eup %977  ;;  %v644_v50 = vsub.f32 %v536_v44, %v599_v33  ;;  %v680_v51 = vadd.f32 1e-07, %v536_v44  ;;  %v606_v52 = vsel %vm604_vm10, %v605_v15, %v603_v45  ;;  %v538_v54 = vmul.f32 %v976_v43, %v1148_v56  ;;  %760 = vst [vmem:[%s1128_s28 + $0x8] sm:$0xff] %v652_v40  ;;  %v430_v36 = vpop.f32.mrf.mxu1 }
  0xf8   : > { %v708_v46 = vadd.f32 1e-07, %v606_v52  ;;  %v608_v55 = vmul.f32 %v978_v49, %v1150_v57  ;;  %v556_v33 = vand.u32 2147483648, %v1203_v28  ;;  %vm623_vm5 = vcmp.eq.f32.partialorder %v1231_v59, inf }
  0xf9   : > { %v653_v58 = vmul.f32 %v644_v50, %v644_v50  ;;  %991 = vlog2.f32 %v680_v51  ;;  %v540_v47 = vsel %vm539_vm11, %v1148_v56, %v538_v54  ;;  %v496_v56 = vmul.f32 %v424_v53, %v424_v53 }
  0xfa   : > { %v980_v62 = vpop.eup %979  ;;  %993 = vlog2.f32 %v708_v46  ;;  %v610_v63 = vsel %vm609_vm12, %v1150_v57, %v608_v55  ;;  %v543_v2 = vsel %vm541_vm13, %v542_v17, %v540_v47  ;;  %v380_v57 = vpop.f32.mrf.mxu0  ;;  %v469_v40 = vmul.f32 %v378_v61, %v378_v61 }
  0xfb   : > { %v982_v1 = vpop.eup %981  ;;  %v613_v4 = vsel %vm611_vm14, %v612_v21, %v610_v63  ;;  %v545_v5 = vmul.f32 %v980_v62, %v1164_v3  ;;  %v645_v8 = vsub.f32 %v543_v2, %v606_v52  ;;  %v681_v9 = vadd.f32 1e-07, %v543_v2  ;;  %761 = vst [vmem:[%s1128_s28 + $0x10] sm:$0xff] %v653_v58 }
  0xfc   : > { %v709_v10 = vadd.f32 1e-07, %v613_v4  ;;  %v615_v11 = vmul.f32 %v982_v1, %v1173_v6  ;;  %995 = vrsqrt.f32 %v1231_v59  ;;  %v384_v26 = vpop.f32.mrf.mxu0  ;;  %v1267_v30 = vadd.f32 %v505_v16, %v496_v56 }
  0xfd   : > { %v547_v12 = vsel %vm546_vm15, %v1164_v3, %v545_v5  ;;  %v654_v14 = vmul.f32 %v645_v8, %v645_v8  ;;  %997 = vlog2.f32 %v681_v9  ;;  %v497_v44 = vmul.f32 %v428_v22, %v428_v22 }
  0xfe   : > { %v550_v15 = vsel %vm548_vm0, %v549_v39, %v547_v12  ;;  %v984_v17 = vpop.eup %983  ;;  %999 = vlog2.f32 %v709_v10  ;;  %v617_v20 = vsel %vm616_vm1, %v1173_v6, %v615_v11  ;;  %v386_v38 = vpop.f32.mrf.mxu0  ;;  %v478_v45 = vmul.f32 %v380_v57, %v380_v57 }
  0xff   : > { %v646_v18 = vsub.f32 %v550_v15, %v613_v4  ;;  %v682_v19 = vadd.f32 1e-07, %v550_v15  ;;  %v620_v21 = vsel %vm618_vm2, %v619_v48, %v617_v20  ;;  %1001 = vrsqrt.f32 %v1254_v13  ;;  %v986_v23 = vpop.eup %985  ;;  %762 = vst [vmem:[%s1128_s28 + $0x18] sm:$0xff] %v654_v14 }
 0x100   : > { %v710_v3 = vadd.f32 1e-07, %v620_v21  ;;  %v552_v29 = vmul.f32 %v986_v23, %v1203_v28  ;;  %v717_v31 = vmul.f32 0.6931472, %v984_v17  ;;  %v506_v51 = vmul.f32 %v430_v36, %v430_v36  ;;  %v388_v58 = vpop.f32.mrf.mxu0 }
 0x101   : > { %v655_v25 = vmul.f32 %v646_v18, %v646_v18  ;;  %1003 = vlog2.f32 %v682_v19  ;;  %vm625_vm6 = vcmp.eq.f32.partialorder %v1231_v59, 0.0  ;;  %v1278_v53 = vadd.f32 %v478_v45, %v469_v40 }
 0x102   : > { %v988_v27 = vpop.eup %987  ;;  %v554_v34 = vsel %vm553_vm3, %v1203_v28, %v552_v29  ;;  %1005 = vrsqrt.f32 %v1267_v30  ;;  %v626_v54 = vand.u32 2147483648, %v1231_v59  ;;  %v1281_v55 = vadd.f32 %v506_v51, %v497_v44  ;;  %v390_v9 = vpop.f32.mrf.mxu0 }
 0x103   : > { %v990_v6 = vpop.eup %989  ;;  %v690_v32 = vmul.f32 0.6931472, %v988_v27  ;;  %763 = vst [vmem:[%s1128_s28 + $0x20] sm:$0xff] %v655_v25  ;;  %1007 = vlog2.f32 %v710_v3  ;;  %v557_v39 = vsel %vm555_vm4, %v556_v33, %v554_v34  ;;  %vm560_vm7 = vcmp.eq.f32.partialorder %v1254_v13, inf  ;;  %903 = vst [vmem:[%s1128_s28 + $0x80] sm:$0xff] %v1278_v53 }
 0x104   : > { %v647_v42 = vsub.f32 %v557_v39, %v620_v21  ;;  %v683_v43 = vadd.f32 1e-07, %v557_v39  ;;  %v719_v49 = vmul.f32 0.6931472, %v990_v6  ;;  %v479_v61 = vmul.f32 %v386_v38, %v386_v38 }
 0x105   : > { %v733_v37 = vsub.f32 %v690_v32, %v717_v31  ;;  %vm562_vm8 = vcmp.eq.f32.partialorder %v1254_v13, 0.0  ;;  %v470_v4 = vmul.f32 %v384_v26, %v384_v26  ;;  %v563_v8 = vand.u32 2147483648, %v1254_v13 }
 0x106   : > { %v992_v41 = vpop.eup %991  ;;  %v656_v52 = vmul.f32 %v647_v42, %v647_v42  ;;  %1009 = vlog2.f32 %v683_v43  ;;  %vm630_vm9 = vcmp.eq.f32.partialorder %v1267_v30, inf  ;;  %v498_v19 = vmul.f32 %v390_v9, %v390_v9 }
 0x107   : > { %v994_v48 = vpop.eup %993  ;;  %v742_v28 = vand.u32 2147483647, %v733_v37  ;;  %v692_v50 = vmul.f32 0.6931472, %v992_v41  ;;  %1011 = vrsqrt.f32 %v1278_v53  ;;  %v1300_v57 = vadd.f32 %v479_v61, %v470_v4 }
 0x108   : > { %v721_v1 = vmul.f32 0.6931472, %v994_v48  ;;  %764 = vst [vmem:[%s1128_s28 + $0x28] sm:$0xff] %v656_v52  ;;  %1013 = vrsqrt.f32 %v1281_v55  ;;  %v489_v22 = vmul.f32 %v388_v58, %v388_v58  ;;  %vm632_vm10 = vcmp.eq.f32.partialorder %v1267_v30, 0.0 }
 0x109   : > { %v734_v46 = vsub.f32 %v692_v50, %v719_v49  ;;  %v996_v60 = vpop.eup %995  ;;  %906 = vst [vmem:[%s1128_s28 + $0x98] sm:$0xff] %v742_v28  ;;  %1015 = vrsqrt.f32 %v1300_v57  ;;  %v633_v29 = vand.u32 2147483648, %v1267_v30  ;;  %904 = vst [vmem:[%s1128_s28 + $0x88] sm:$0xff] %v1300_v57  ;;  %vm518_vm11 = vcmp.eq.f32.partialorder %v1121_v24, inf }
 0x10a   : > { %v998_v62 = vpop.eup %997  ;;  %v622_v63 = vmul.f32 %v996_v60, %v1231_v59  ;;  %v1316_v31 = vadd.f32 %v498_v19, %v489_v22  ;;  %v517_v41 = vmul.f32 %v1208_v35, %v1121_v24  ;;  %vm567_vm12 = vcmp.eq.f32.partialorder %v1278_v53, inf }
 0x10b   : > { %v743_v47 = vand.u32 2147483647, %v734_v46  ;;  %v1000_v0 = vpop.eup %999  ;;  %v694_v2 = vmul.f32 0.6931472, %v998_v62  ;;  %vm569_vm13 = vcmp.eq.f32.partialorder %v1278_v53, 0.0  ;;  %v570_v42 = vand.u32 2147483648, %v1278_v53 }
 0x10c   : > { %v1002_v5 = vpop.eup %1001  ;;  %v624_v7 = vsel %vm623_vm5, %v1231_v59, %v622_v63  ;;  %v723_v14 = vmul.f32 0.6931472, %v1000_v0  ;;  %vm637_vm14 = vcmp.eq.f32.partialorder %v1281_v55, inf  ;;  %vm639_vm15 = vcmp.eq.f32.partialorder %v1281_v55, 0.0 }
 0x10d   : > { %v735_v11 = vsub.f32 %v694_v2, %v721_v1  ;;  %v627_v12 = vsel %vm625_vm6, %v626_v54, %v624_v7  ;;  %v559_v56 = vmul.f32 %v1002_v5, %v1254_v13  ;;  %907 = vst [vmem:[%s1128_s28 + $0xa0] sm:$0xff] %v743_v47  ;;  %v640_v35 = vand.u32 2147483648, %v1281_v55 }
 0x10e   : > { %v1004_v10 = vpop.eup %1003  ;;  %v711_v16 = vadd.f32 1e-07, %v627_v12  ;;  %v521_v61 = vand.u32 2147483648, %v1121_v24  ;;  %vm574_vm0 = vcmp.eq.f32.partialorder %v1300_v57, inf  ;;  %vm576_vm1 = vcmp.eq.f32.partialorder %v1300_v57, 0.0 }
 0x10f   : > { %v696_v15 = vmul.f32 0.6931472, %v1004_v10  ;;  %v744_v17 = vand.u32 2147483647, %v735_v11  ;;  %v561_v18 = vsel %vm560_vm7, %v1254_v13, %v559_v56  ;;  %v1006_v20 = vpop.eup %1005  ;;  %vm520_vm2 = vcmp.eq.f32.partialorder %v1121_v24, 0.0 }
 0x110   : > { %1017 = vlog2.f32 %v711_v16  ;;  %v564_v21 = vsel %vm562_vm8, %v563_v8, %v561_v18  ;;  %v1008_v23 = vpop.eup %1007  ;;  %v629_v26 = vmul.f32 %v1006_v20, %v1267_v30  ;;  %vm581_vm3 = vcmp.eq.f32.partialorder %v1316_v31, inf }
 0x111   : > { %v736_v59 = vsub.f32 %v696_v15, %v723_v14  ;;  %v648_v25 = vsub.f32 %v564_v21, %v627_v12  ;;  %v684_v3 = vadd.f32 1e-07, %v564_v21  ;;  %908 = vst [vmem:[%s1128_s28 + $0xa8] sm:$0xff] %v744_v17  ;;  %v725_v34 = vmul.f32 0.6931472, %v1008_v23 }
 0x112   : > { %v631_v13 = vsel %vm630_vm9, %v1267_v30, %v629_v26  ;;  %vm583_vm4 = vcmp.eq.f32.partialorder %v1316_v31, 0.0 }
 0x113   : > { %v745_v27 = vand.u32 2147483647, %v736_v59  ;;  %v657_v6 = vmul.f32 %v648_v25, %v648_v25  ;;  %1019 = vlog2.f32 %v684_v3  ;;  %v1010_v32 = vpop.eup %1009  ;;  %v634_v33 = vsel %vm632_vm10, %v633_v29, %v631_v13 }
 0x114   : > { %v698_v36 = vmul.f32 0.6931472, %v1010_v32  ;;  %v1012_v37 = vpop.eup %1011  ;;  %v712_v39 = vadd.f32 1e-07, %v634_v33  ;;  %1021 = vrsqrt.f32 %v1316_v31 }
 0x115   : > { %909 = vst [vmem:[%s1128_s28 + $0xb0] sm:$0xff] %v745_v27  ;;  %765 = vst [vmem:[%s1128_s28 + $0x30] sm:$0xff] %v657_v6  ;;  %v566_v38 = vmul.f32 %v1012_v37, %v1278_v53  ;;  %v1014_v30 = vpop.eup %1013 }
 0x116   : > { %v737_v40 = vsub.f32 %v698_v36, %v725_v34  ;;  %v636_v45 = vmul.f32 %v1014_v30, %v1281_v55  ;;  %1023 = vlog2.f32 %v712_v39  ;;  %v1016_v51 = vpop.eup %1015 }
 0x117   : > { %v568_v44 = vsel %vm567_vm12, %v1278_v53, %v566_v38  ;;  %v519_v53 = vsel %vm518_vm11, %v1121_v24, %v517_v41  ;;  %v573_v60 = vmul.f32 %v1016_v51, %v1300_v57  ;;  %v584_v24 = vand.u32 2147483648, %v1316_v31 }
 0x118   : > { %v746_v43 = vand.u32 2147483647, %v737_v40  ;;  %v571_v48 = vsel %vm569_vm13, %v570_v42, %v568_v44  ;;  %v638_v50 = vsel %vm637_vm14, %v1281_v55, %v636_v45  ;;  %v577_v55 = vand.u32 2147483648, %v1300_v57 }
 0x119   : > { %v649_v28 = vsub.f32 %v571_v48, %v634_v33  ;;  %v685_v49 = vadd.f32 1e-07, %v571_v48  ;;  %v641_v52 = vsel %vm639_vm15, %v640_v35, %v638_v50  ;;  %v575_v62 = vsel %vm574_vm0, %v1300_v57, %v573_v60 }
 0x11a   : > { %910 = vst [vmem:[%s1128_s28 + $0xb8] sm:$0xff] %v746_v43  ;;  %v713_v58 = vadd.f32 1e-07, %v641_v52  ;;  %v578_v0 = vsel %vm576_vm1, %v577_v55, %v575_v62  ;;  %v522_v1 = vsel %vm520_vm2, %v521_v61, %v519_v53 }
 0x11b   : > { %v658_v54 = vmul.f32 %v649_v28, %v649_v28  ;;  %1025 = vlog2.f32 %v685_v49  ;;  %v650_v4 = vsub.f32 %v578_v0, %v641_v52  ;;  %v686_v5 = vadd.f32 1e-07, %v578_v0 }
 0x11c   : > { %1027 = vlog2.f32 %v713_v58  ;;  %v678_v11 = vadd.f32 1e-07, %v522_v1 }
 0x11d   : > { %v1018_v46 = vpop.eup %1017  ;;  %766 = vst [vmem:[%s1128_s28 + $0x38] sm:$0xff] %v658_v54  ;;  %v659_v9 = vmul.f32 %v650_v4, %v650_v4  ;;  %1029 = vlog2.f32 %v686_v5 }
 0x11e   : > { %v727_v63 = vmul.f32 0.6931472, %v1018_v46  ;;  %1031 = vlog2.f32 %v678_v11 }
 0x11f   : > { %767 = vst [vmem:[%s1128_s28 + $0x40] sm:$0xff] %v659_v9 }
 0x120   : > { %v1020_v47 = vpop.eup %1019 }
 0x121   : > { %v700_v2 = vmul.f32 0.6931472, %v1020_v47  ;;  %v1022_v7 = vpop.eup %1021 }
 0x122   : > { %v580_v10 = vmul.f32 %v1022_v7, %v1316_v31 }
 0x123   : > { %v738_v8 = vsub.f32 %v700_v2, %v727_v63  ;;  %v1024_v57 = vpop.eup %1023 }
 0x124   : > { %v582_v56 = vsel %vm581_vm3, %v1316_v31, %v580_v10  ;;  %v729_v19 = vmul.f32 0.6931472, %v1024_v57 }
 0x125   : > { %v747_v12 = vand.u32 2147483647, %v738_v8  ;;  %v585_v14 = vsel %vm583_vm4, %v584_v24, %v582_v56 }
 0x126   : > { %v642_v15 = vsub.f32 %v522_v1, %v585_v14  ;;  %v705_v16 = vadd.f32 1e-07, %v585_v14 }
 0x127   : > { %911 = vst [vmem:[%s1128_s28 + $0xc0] sm:$0xff] %v747_v12 }
 0x128   : > { %v1026_v17 = vpop.eup %1025  ;;  %v651_v18 = vmul.f32 %v642_v15, %v642_v15  ;;  %1033 = vlog2.f32 %v705_v16 }
 0x129   : > { %v702_v20 = vmul.f32 0.6931472, %v1026_v17  ;;  %v1028_v21 = vpop.eup %1027 }
 0x12a   : > { %759 = vst [vmem:[%s1128_s28] sm:$0xff] %v651_v18  ;;  %v1030_v23 = vpop.eup %1029  ;;  %v731_v25 = vmul.f32 0.6931472, %v1028_v21 }
 0x12b   : > { %v739_v59 = vsub.f32 %v702_v20, %v729_v19  ;;  %v704_v3 = vmul.f32 0.6931472, %v1030_v23  ;;  %v1032_v27 = vpop.eup %1031 }
 0x12c   : > { %v688_v13 = vmul.f32 0.6931472, %v1032_v27 }
 0x12d   : > { %v748_v22 = vand.u32 2147483647, %v739_v59  ;;  %v740_v26 = vsub.f32 %v704_v3, %v731_v25 }
 0x12f   : > { %912 = vst [vmem:[%s1128_s28 + $0xc8] sm:$0xff] %v748_v22  ;;  %v749_v29 = vand.u32 2147483647, %v740_v26 }
 0x131   : > { %913 = vst [vmem:[%s1128_s28 + $0xd0] sm:$0xff] %v749_v29 }
 0x135   : > { %v1034_v6 = vpop.eup %1033 }
 0x136   : > { %v715_v31 = vmul.f32 0.6931472, %v1034_v6 }
 0x138   : > { %v732_v32 = vsub.f32 %v688_v13, %v715_v31 }
 0x13a   : > { %v741_v33 = vand.u32 2147483647, %v732_v32 }
 0x13c   : > { %905 = vst [vmem:[%s1128_s28 + $0x90] sm:$0xff] %v741_v33 }
 0x13d PF: > { %s12_s11 = sadd.s32 1, %s1057_s11   ;;  %s1371_s9 = smov %s1053_s10 }
 0x13e   : > { %p9_p5 = scmp.ge.s32.totalorder %s12_s11, 4   ;;  %s1372_s10 = smov %s1374_s12 }
 0x140   :  { %11 = sbr.rel (!%p9_p5) target bundleno = 2 (0x2), region = 64 }

</bundles_post_ra>
